<compile_context>
chip_gen: v7x
topology: tpu7x:2x2x1
jax: 0.10.0
libtpu: 0.0.40
codegen_flags: <defaults>
</compile_context>

<pallas_src>
import jax
import jax.numpy as jnp
from jax.experimental import pallas as pl
from jax.experimental.pallas import tpu as pltpu


_LANE_CHOICES = (512, 256, 128)     # lane widths tried for a copy-free reshape
_MIN_LANES = 128


def _lrc_kernel(w_ref, b_ref, x_ref, o_ref):
    # w_ref / b_ref are (1, 1) f32 scalars in SMEM; x_ref / o_ref are VMEM tiles.
    dt = x_ref.dtype
    if jnp.issubdtype(dt, jnp.floating) and jnp.dtype(dt).itemsize < 4:
        # Narrow floats (bf16/fp8): compute in the input dtype — halves vreg
        # traffic and drops two casts per vreg (v6e/v7x VPUs have bf16 VALUs).
        w = w_ref[0, 0].astype(dt)
        b = b_ref[0, 0].astype(dt)
        o_ref[...] = x_ref[...] * w + b
    else:
        # f32 (and other) inputs: f32 compute, cast back to the output dtype.
        w = w_ref[0, 0]
        b = b_ref[0, 0]
        o_ref[...] = (x_ref[...] * w + b).astype(o_ref.dtype)


def _min_sublanes(dtype):
    # dtype-aware sublane minimum: 8 (4-byte), 16 (2-byte), 32 (1-byte).
    itemsize = jnp.dtype(dtype).itemsize
    return {4: 8, 2: 16, 1: 32}.get(itemsize, 8)


def _round_up(a, b):
    return ((a + b - 1) // b) * b


def _vmem_capacity_bytes():
    """Physical VMEM per TensorCore; conservative (v7x) fallback if unknown."""
    try:
        info = pltpu.get_tpu_info()
        cap = getattr(info, "vmem_capacity_bytes", None)
        if cap:
            return int(cap)
    except Exception:
        pass
    return 64 * 1024 * 1024


def _lrc_2d(x2d, weight, bias):
    """Run the kernel on an already lane-dense (rows, lanes) slab."""
    rows, lanes = x2d.shape
    dtype = x2d.dtype
    itemsize = jnp.dtype(dtype).itemsize
    min_sub = _min_sublanes(dtype)

    vmem_cap = _vmem_capacity_bytes()
    # Generation-aware block target: ~8 MiB where VMEM is 128 MiB (v5e/v6e),
    # ~6 MiB on v7x (64 MiB per TensorCore).
    if vmem_cap >= 96 * 1024 * 1024:
        block_bytes = 8 * 1024 * 1024
    else:
        block_bytes = 6 * 1024 * 1024

    target_rows = max(min_sub, block_bytes // (lanes * itemsize))
    target_rows = (target_rows // min_sub) * min_sub

    if rows < 2 * min_sub:
        # Tiny input: single block equal to the full array (always legal).
        tile_rows = rows
    elif rows <= target_rows:
        # Small/mid input: still emit >= 2 blocks so both v7x TensorCores
        # get work (single-TC v5e/v6e are unaffected by the extra step).
        tile_rows = min(target_rows, _round_up(pl.cdiv(rows, 2), min_sub))
    else:
        tile_rows = target_rows

    grid = (pl.cdiv(rows, tile_rows),)

    # Double-buffered in + out tiles ~= 4 x block; add scheduler headroom but
    # never request more than ~75% of physical VMEM (v7x has only 64 MiB/TC).
    tile_bytes = tile_rows * lanes * itemsize
    vmem_limit = min(vmem_cap * 3 // 4, 4 * tile_bytes + 16 * 1024 * 1024)
    vmem_limit = max(vmem_limit, 16 * 1024 * 1024)

    n = rows * lanes
    cost = pl.CostEstimate(
        flops=2 * n,
        transcendentals=0,
        bytes_accessed=2 * n * itemsize,
    )

    w2d = jnp.asarray(weight, jnp.float32).reshape(1, 1)
    b2d = jnp.asarray(bias, jnp.float32).reshape(1, 1)

    return pl.pallas_call(
        _lrc_kernel,
        out_shape=jax.ShapeDtypeStruct((rows, lanes), dtype),
        grid=grid,
        in_specs=[
            pl.BlockSpec(memory_space=pltpu.SMEM),   # weight scalar
            pl.BlockSpec(memory_space=pltpu.SMEM),   # bias scalar
            pl.BlockSpec((tile_rows, lanes), lambda i: (i, 0)),
        ],
        out_specs=pl.BlockSpec((tile_rows, lanes), lambda i: (i, 0)),
        compiler_params=pltpu.CompilerParams(
            dimension_semantics=("parallel",),
            vmem_limit_bytes=int(vmem_limit),
        ),
        cost_estimate=cost,
    )(w2d, b2d, x2d)


def lrc_forward(x, weight, bias):
    """y = weight * x + bias, scalar weight/bias of shape (1,), any x shape."""
    orig_shape = x.shape
    n = x.size
    if n == 0:
        return x

    # Common path: pick the widest lane count that divides n -> pure reshape,
    # no pad or slice copies.
    for lanes in _LANE_CHOICES:
        if n % lanes == 0:
            out2d = _lrc_2d(x.reshape(n // lanes, lanes), weight, bias)
            return out2d.reshape(orig_shape)

    # Lane-unaligned fallback: kernel on the 128-aligned prefix (no padded
    # full-array round trip); the <128-element tail is computed in plain jnp.
    w = jnp.asarray(weight, jnp.float32).reshape(())
    b = jnp.asarray(bias, jnp.float32).reshape(())
    x_flat = x.reshape(-1)
    n_main = (n // _MIN_LANES) * _MIN_LANES
    if n_main == 0:
        y = (w * x_flat + b).astype(x.dtype)
        return y.reshape(orig_shape)
    main_out = _lrc_2d(
        x_flat[:n_main].reshape(-1, _MIN_LANES), weight, bias
    ).reshape(-1)
    tail_out = (w * x_flat[n_main:] + b).astype(x.dtype)
    return jnp.concatenate([main_out, tail_out]).reshape(orig_shape)


if __name__ == "__main__":
    key = jax.random.PRNGKey(0)
    kx, kw, kb, kx2, kx3 = jax.random.split(key, 5)

    # Small NCHW input consistent with the module's forward.
    x = jax.random.normal(kx, (2, 4, 16, 16), dtype=jnp.float32)
    # Deterministic parameter init (mimics torch.rand(1) -> uniform [0, 1)).
    weight = jax.random.uniform(kw, (1,), dtype=jnp.float32)
    bias = jax.random.uniform(kb, (1,), dtype=jnp.float32)

    y = lrc_forward(x, weight, bias)
    y = jax.block_until_ready(y)

    y_ref = weight[0] * x + bias[0]
    assert y.shape == x.shape and y.dtype == x.dtype
    assert jnp.allclose(y, y_ref, atol=1e-6, rtol=1e-6)

    # Exercise the lane-unaligned fallback path (prefix kernel + jnp tail).
    x_odd = jax.random.normal(kx2, (3, 5, 7, 11), dtype=jnp.float32)
    y_odd = jax.block_until_ready(lrc_forward(x_odd, weight, bias))
    assert jnp.allclose(y_odd, weight[0] * x_odd + bias[0], atol=1e-6, rtol=1e-6)

    # Exercise the multi-block (>=2 grid steps) path on a mid-size input.
    x_big = jax.random.normal(kx3, (8, 64, 64, 64), dtype=jnp.float32)
    y_big = jax.block_until_ready(lrc_forward(x_big, weight, bias))
    assert jnp.allclose(y_big, weight[0] * x_big + bias[0], atol=1e-6, rtol=1e-6)

    print("KERNEL_OK")
</pallas_src>

<mosaic_0001>
module attributes {stable_mosaic.version = 11 : i64} {
  func.func @_lrc_kernel(%arg0: i32, %arg1: memref<1x1xf32, #tpu.memory_space<smem>>, %arg2: memref<1x1xf32, #tpu.memory_space<smem>>, %arg3: memref<4x512xf32, #tpu.memory_space<vmem>>, %arg4: memref<4x512xf32, #tpu.memory_space<vmem>>) attributes {dimension_semantics = [#tpu.dimension_semantics<parallel>], iteration_bounds = array<i64: 1>, scalar_prefetch = 0 : i64, scratch_operands = 0 : i64, tpu.core_type = #tpu.core_type<tc>, window_params = [{transform_indices = @transform_0, window_bounds = array<i64: 1, 1>}, {transform_indices = @transform_1, window_bounds = array<i64: 1, 1>}, {transform_indices = @transform_2, window_bounds = array<i64: 4, 512>}, {transform_indices = @transform_3, window_bounds = array<i64: 4, 512>}]} {
    %c0 = arith.constant 0 : index
    %c0_0 = arith.constant 0 : index
    %0 = memref.load %arg1[%c0, %c0_0] : memref<1x1xf32, #tpu.memory_space<smem>>
    %c0_1 = arith.constant 0 : index
    %c0_2 = arith.constant 0 : index
    %1 = memref.load %arg2[%c0_1, %c0_2] : memref<1x1xf32, #tpu.memory_space<smem>>
    %c0_3 = arith.constant 0 : index
    %c0_4 = arith.constant 0 : index
    %2 = vector.load %arg3[%c0_3, %c0_4] : memref<4x512xf32, #tpu.memory_space<vmem>>, vector<4x512xf32>
    %3 = vector.broadcast %0 : f32 to vector<4x512xf32>
    %4 = arith.mulf %2, %3 : vector<4x512xf32>
    %5 = vector.broadcast %1 : f32 to vector<4x512xf32>
    %6 = arith.addf %4, %5 : vector<4x512xf32>
    %c0_5 = arith.constant 0 : index
    %c0_6 = arith.constant 0 : index
    %7 = vector.load %arg4[%c0_5, %c0_6] : memref<4x512xf32, #tpu.memory_space<vmem>>, vector<4x512xf32>
    tpu.vector_store %arg4[%c0_5, %c0_6], %6 {strides = array<i32>} : memref<4x512xf32, #tpu.memory_space<vmem>>, vector<4x512xf32>,
    return
  }
  func.func @transform_0(%arg0: i32) -> (i32, i32) {
    %c0_i32 = arith.constant 0 : i32
    %c0_i32_0 = arith.constant 0 : i32
    %c0_i32_1 = arith.constant 0 : i32
    return %c0_i32, %c0_i32_0 : i32, i32
  }
  func.func @transform_1(%arg0: i32) -> (i32, i32) {
    %c0_i32 = arith.constant 0 : i32
    %c0_i32_0 = arith.constant 0 : i32
    %c0_i32_1 = arith.constant 0 : i32
    return %c0_i32, %c0_i32_0 : i32, i32
  }
  func.func @transform_2(%arg0: i32) -> (i32, i32) {
    %c0_i32 = arith.constant 0 : i32
    %c0_i32_0 = arith.constant 0 : i32
    return %arg0, %c0_i32 : i32, i32
  }
  func.func @transform_3(%arg0: i32) -> (i32, i32) {
    %c0_i32 = arith.constant 0 : i32
    %c0_i32_0 = arith.constant 0 : i32
    return %arg0, %c0_i32 : i32, i32
  }
}

</mosaic_0001>

<bundles_post_ra>
// kernel: tpu_custom_call.1
= control target key start
LH: loop header
LB: loop body
LE: loop exit
PB: predicated region body
PF: predicated region fallthrough
CT: control target
= control target key end

     0   :  { %10 = vsyncpa [#allocation5], 0  ;;  %s158_s0 = inlined_call_operand.<no memory space> [shape: f32[1,1], index: 0, kind: input, shape index: {}]   ;;  %s159_s1 = inlined_call_operand.<no memory space> [shape: f32[1,1], index: 1, kind: input, shape index: {}]   ;;  %s160_s2 = inlined_call_operand.hbm [shape: f32[4,512], index: 2, kind: input, shape index: {}]   ;;  %s161_s3 = inlined_call_operand.hbm [shape: f32[4,512], index: 3, kind: output, shape index: {}]  }
   0x1   :  { %11 = vsyncpa [#allocation6], 0  ;;  %s106_s12 = smov [#allocation4]   ;;  %s58_s16 = scalar_lea.hbm %s160_s2, 256 }
   0x2   :  { %s22_s13 = sshll.u32 %s106_s12, 4  ;;  %p59_p0 = scmp.ne.s32.totalorder %s160_s2, %s58_s16  ;;  %s23_s13 = int_to_ptr.vmem [resolvable:$true] %s22_s13 }
   0x3   :  { %p62_p1 = scmp.lt.u32.totalorder %s58_s16, %s160_s2 }
   0x5   :  { %p64_p2 = pnand %p62_p1, %p59_p0 }
   0x7   :  { %67 = shalt.err (!%p64_p2)
}
   0x8   :  { %s68_s21 = scalar_lea.vmem %s23_s13, 256  ;;  %p73_p4 = scmp.lt.s32.totalorder %s23_s13, %s23_s13 }
   0x9   :  { %p69_p3 = scmp.ne.s32.totalorder %s23_s13, %s68_s21  ;;  %p74_p5 = scmp.lt.s32.totalorder %s68_s21, %s68_s21 }
   0xb   :  { %p75_p6 = por %p74_p5, %p73_p4 }
   0xd   :  { %p76_p7 = pnand %p75_p6, %p69_p3 }
   0xf   :  { %79 = shalt.err (!%p76_p7)
}
  0x10   :  { %25 = dma.hbm_to_vmem [thread:$0]  %s160_s2, 256, %s23_s13, [#allocation5]  }
  0x11   :  { %102 = dma.done.wait [#allocation5], 256  }
  0x12   :  { %103 = vsyncadd [#allocation5], 4294967040  ;;  %v33_v0 = vstv %s158_s0  ;;  %v31_v1 = vld [vmem:[#allocation4] sm:$0xff]  ;;  %v36_v2 = vstv %s159_s1  ;;  %v32_v3 = vld [vmem:[#allocation4 + $0x8] sm:$0xff]  ;;  %s107_s28 = smov [#allocation7]  }
  0x13   :  { %s47_s29 = sshll.u32 %s107_s28, 4  ;;  %v34_v4 = vmul.f32 %v33_v0, %v31_v1  ;;  %v35_v5 = vmul.f32 %v33_v0, %v32_v3  ;;  %s48_s29 = int_to_ptr.vmem [resolvable:$true] %s47_s29 }
  0x14   :  { %s80_s2 = scalar_lea.vmem %s48_s29, 256  ;;  %p85_p9 = scmp.lt.s32.totalorder %s48_s29, %s48_s29 }
  0x15   :  { %v37_v6 = vadd.f32 %v36_v2, %v34_v4  ;;  %v38_v7 = vadd.f32 %v36_v2, %v35_v5  ;;  %p81_p8 = scmp.ne.s32.totalorder %s48_s29, %s80_s2  ;;  %p86_p10 = scmp.lt.s32.totalorder %s80_s2, %s80_s2 }
  0x17   :  { %39 = vst [vmem:[#allocation7] sm:$0xff] %v37_v6  ;;  %40 = vst [vmem:[#allocation7 + $0x8] sm:$0xff] %v38_v7  ;;  %p87_p11 = por %p86_p10, %p85_p9 }
  0x19   :  { %p88_p12 = pnand %p87_p11, %p81_p8 }
  0x1b   :  { %91 = shalt.err (!%p88_p12)
}
  0x1c   :  { %s92_s1 = scalar_lea.hbm %s161_s3, 256 }
  0x1d   :  { %p93_p13 = scmp.ne.s32.totalorder %s161_s3, %s92_s1  ;;  %p96_p0 = scmp.lt.u32.totalorder %s92_s1, %s161_s3 }
  0x1f   :  { %p98_p1 = pnand %p96_p0, %p93_p13 }
  0x21   :  { %101 = shalt.err (!%p98_p1)
}
  0x22   :  { %50 = dma.vmem_to_hbm [thread:$0]  %s48_s29, 256, %s161_s3, [#allocation6]  }
  0x23   :  { %104 = dma.done.wait [#allocation6], 256  }
  0x24   :  { %105 = vsyncadd [#allocation6], 4294967040 }
  0x25   :  { %54 = vsyncpa [#allocation5], 1 }
  0x26   :  { %55 = vsyncpa [#allocation6], 1 }

</bundles_post_ra>
